<compile_context>
chip_gen: v6e
topology: v6e:2x2x1
jax: 0.10.0
libtpu: 0.0.40
codegen_flags: <defaults>
</compile_context>

<pallas_src>
import functools

import jax
import jax.numpy as jnp
from jax.experimental import pallas as pl
from jax.experimental.pallas import tpu as pltpu

LANES = 128
MAX_TILE_BYTES = 1 << 20   # ~1 MiB per input stream per pipeline buffer
ACC_SUBLANES = 8           # f32 vreg-shaped accumulator: (8, 128)


# ---------------------------------------------------------------------------
# Tiling helpers
# ---------------------------------------------------------------------------
def _sublane_multiple(dtype):
    # f32 -> 8, bf16/f16 -> 16, int8/fp8 -> 32 (native packed sublane tile).
    return {4: 8, 2: 16, 1: 32}[jnp.dtype(dtype).itemsize]


def _choose_tile_rows(rows, dtype):
    """Pick a row-block: <= ~MAX_TILE_BYTES per buffer, dtype-aware multiple."""
    mult = _sublane_multiple(dtype)
    target = MAX_TILE_BYTES // (LANES * jnp.dtype(dtype).itemsize)
    target = max(mult, (target // mult) * mult)
    if rows <= target:
        return ((rows + mult - 1) // mult) * mult
    return target


def _prep(x, tile_rows):
    """Flatten to (R, 128) with R a multiple of tile_rows; pad only if needed."""
    flat = x.reshape(-1)
    n = flat.shape[0]
    chunk = tile_rows * LANES
    padded = ((n + chunk - 1) // chunk) * chunk
    if padded != n:
        flat = jnp.pad(flat, (0, padded - n))
    return flat.reshape(padded // LANES, LANES)


# ---------------------------------------------------------------------------
# Kernels: reduction='none'
# ---------------------------------------------------------------------------
def _l1_elem_kernel(pred_ref, tgt_ref, out_ref, *, loss_weight):
    d = jnp.abs(pred_ref[...] - tgt_ref[...])
    if loss_weight != 1.0:
        d = d * jnp.array(loss_weight, dtype=d.dtype)
    out_ref[...] = d.astype(out_ref.dtype)


def _l1_elem_w_kernel(pred_ref, tgt_ref, w_ref, out_ref, *, loss_weight):
    d = jnp.abs(pred_ref[...] - tgt_ref[...])
    d = d * w_ref[...].astype(d.dtype)           # explicit cast (dtype safety)
    if loss_weight != 1.0:
        d = d * jnp.array(loss_weight, dtype=d.dtype)
    out_ref[...] = d.astype(out_ref.dtype)


# ---------------------------------------------------------------------------
# Kernels: reduction='sum' / 'mean'
# ---------------------------------------------------------------------------
def _abs_diff_f32(pred_ref, tgt_ref):
    return jnp.abs(pred_ref[...].astype(jnp.float32)
                   - tgt_ref[...].astype(jnp.float32))


def _accumulate(out_ref, acc_ref, block):
    """Lane-parallel accumulation; cross-lane reduce only on the last step."""
    @pl.when(pl.program_id(1) == 0)
    def _():
        acc_ref[...] = jnp.zeros_like(acc_ref)

    # (tile_rows, 128) -> (tile_rows//8, 8, 128) summed over the leading axis:
    # pure VPU vreg adds, no XLU work in the hot loop.
    acc_ref[...] += block.reshape(-1, ACC_SUBLANES, LANES).sum(axis=0)

    @pl.when(pl.program_id(1) == pl.num_programs(1) - 1)
    def _():
        out_ref[0, 0] = jnp.sum(acc_ref[...])


def _l1_sum_kernel(pred_ref, tgt_ref, out_ref, acc_ref):
    _accumulate(out_ref, acc_ref, _abs_diff_f32(pred_ref, tgt_ref))


def _l1_sum_w_kernel(pred_ref, tgt_ref, w_ref, out_ref, acc_ref):
    block = _abs_diff_f32(pred_ref, tgt_ref) * w_ref[...].astype(jnp.float32)
    _accumulate(out_ref, acc_ref, block)


# ---------------------------------------------------------------------------
# Wrappers
# ---------------------------------------------------------------------------
def _l1_none(pred, target, weight, loss_weight):
    orig_shape = pred.shape
    n = pred.size
    rows = -(-n // LANES)
    tile_rows = _choose_tile_rows(rows, pred.dtype)

    p2 = _prep(pred, tile_rows)
    t2 = _prep(target, tile_rows)
    padded_rows = p2.shape[0]
    grid = (padded_rows // tile_rows,)
    blk = pl.BlockSpec((tile_rows, LANES), lambda i: (i, 0))

    if weight is None:
        kern = functools.partial(_l1_elem_kernel, loss_weight=loss_weight)
        ins, in_specs = [p2, t2], [blk, blk]
    else:
        w2 = _prep(weight, tile_rows)
        kern = functools.partial(_l1_elem_w_kernel, loss_weight=loss_weight)
        ins, in_specs = [p2, t2, w2], [blk, blk, blk]

    out2 = pl.pallas_call(
        kern,
        out_shape=jax.ShapeDtypeStruct((padded_rows, LANES), pred.dtype),
        grid_spec=pltpu.PrefetchScalarGridSpec(
            num_scalar_prefetch=0,
            grid=grid,
            in_specs=in_specs,
            out_specs=blk,
        ),
        compiler_params=pltpu.CompilerParams(
            dimension_semantics=("parallel",)),
    )(*ins)

    if padded_rows * LANES == n:          # common aligned case: no extra copy
        return out2.reshape(orig_shape)
    return out2.reshape(-1)[:n].reshape(orig_shape)


def _l1_sum(pred, target, weight):
    n = pred.size
    rows = -(-n // LANES)
    tile_rows = _choose_tile_rows(rows, pred.dtype)

    p2 = _prep(pred, tile_rows)
    t2 = _prep(target, tile_rows)
    padded_rows = p2.shape[0]
    row_blocks = padded_rows // tile_rows

    # Split reduction across TensorCores when the block count allows it
    # (exploits v7x's 2 TC/chip; harmless serial loop on v5e/v6e).
    shards = 2 if (row_blocks % 2 == 0 and row_blocks >= 2) else 1
    blocks_per_shard = row_blocks // shards

    def in_map(c, i):
        return (c * blocks_per_shard + i, 0)

    blk = pl.BlockSpec((tile_rows, LANES), in_map)
    out_spec = pl.BlockSpec((1, 1), lambda c, i: (c, 0),
                            memory_space=pltpu.SMEM)

    if weight is None:
        kern = _l1_sum_kernel
        ins, in_specs = [p2, t2], [blk, blk]
    else:
        w2 = _prep(weight, tile_rows)
        kern = _l1_sum_w_kernel
        ins, in_specs = [p2, t2, w2], [blk, blk, blk]

    partials = pl.pallas_call(
        kern,
        out_shape=jax.ShapeDtypeStruct((shards, 1), jnp.float32),
        grid_spec=pltpu.PrefetchScalarGridSpec(
            num_scalar_prefetch=0,
            grid=(shards, blocks_per_shard),
            in_specs=in_specs,
            out_specs=out_spec,
            scratch_shapes=[pltpu.VMEM((ACC_SUBLANES, LANES), jnp.float32)],
        ),
        compiler_params=pltpu.CompilerParams(
            dimension_semantics=("parallel", "arbitrary")),
    )(*ins)
    return jnp.sum(partials)


@functools.partial(jax.jit, static_argnames=("loss_weight", "reduction"))
def l1_loss_pallas(pred, target, weight=None, loss_weight=1.0, reduction="mean"):
    """Pallas equivalent of L1Loss.forward (weighted_loss semantics).

    pred/target/weight: (N, C, H, W). reduction in {'none','mean','sum'}.
    'mean'/'sum' reduce the *weighted* elementwise loss; 'mean' divides by the
    total element count (matching the PyTorch weighted_loss default).
    """
    if reduction not in ("none", "mean", "sum"):
        raise ValueError(f"Unsupported reduction mode: {reduction}")
    if reduction == "none":
        return _l1_none(pred, target, weight, float(loss_weight))
    s = _l1_sum(pred, target, weight)
    if reduction == "mean":
        s = s / jnp.float32(pred.size)
    return (jnp.float32(loss_weight) * s).astype(pred.dtype)


# ---------------------------------------------------------------------------
# Demo / correctness check
# ---------------------------------------------------------------------------
if __name__ == "__main__":
    key = jax.random.PRNGKey(0)
    k1, k2, k3 = jax.random.split(key, 3)

    N, C, H, W = 2, 4, 16, 16
    pred = jax.random.normal(k1, (N, C, H, W), dtype=jnp.float32)
    target = jax.random.normal(k2, (N, C, H, W), dtype=jnp.float32)
    weight = jax.random.uniform(k3, (N, C, H, W), dtype=jnp.float32)

    # Default module config: loss_weight=1.0, reduction='mean', weight=None.
    out_mean = l1_loss_pallas(pred, target, loss_weight=1.0, reduction="mean")
    out_sum = l1_loss_pallas(pred, target, weight, loss_weight=0.5, reduction="sum")
    out_none = l1_loss_pallas(pred, target, weight, loss_weight=2.0, reduction="none")
    jax.block_until_ready((out_mean, out_sum, out_none))

    ref_mean = jnp.mean(jnp.abs(pred - target))
    ref_sum = 0.5 * jnp.sum(jnp.abs(pred - target) * weight)
    ref_none = 2.0 * jnp.abs(pred - target) * weight

    assert jnp.allclose(out_mean, ref_mean, rtol=1e-5, atol=1e-5)
    assert jnp.allclose(out_sum, ref_sum, rtol=1e-5, atol=1e-4)
    assert jnp.allclose(out_none, ref_none, rtol=1e-5, atol=1e-6)
    assert out_none.shape == pred.shape

    # Ragged case (exercises the pad + tail-slice path).
    k4, k5 = jax.random.split(k3)
    p_r = jax.random.normal(k4, (1, 3, 7, 5), dtype=jnp.float32)
    t_r = jax.random.normal(k5, (1, 3, 7, 5), dtype=jnp.float32)
    out_r_mean = l1_loss_pallas(p_r, t_r, loss_weight=1.0, reduction="mean")
    out_r_none = l1_loss_pallas(p_r, t_r, loss_weight=1.0, reduction="none")
    jax.block_until_ready((out_r_mean, out_r_none))
    assert jnp.allclose(out_r_mean, jnp.mean(jnp.abs(p_r - t_r)), rtol=1e-5, atol=1e-5)
    assert jnp.allclose(out_r_none, jnp.abs(p_r - t_r), rtol=1e-5, atol=1e-6)
    assert out_r_none.shape == p_r.shape

    print("KERNEL_OK")
</pallas_src>

<mosaic_0001>
module attributes {stable_mosaic.version = 11 : i64} {
  func.func @_l1_sum_kernel(%arg0: i32, %arg1: i32, %arg2: memref<16x128xf32, #tpu.memory_space<vmem>>, %arg3: memref<16x128xf32, #tpu.memory_space<vmem>>, %arg4: memref<1x1xf32, #tpu.memory_space<smem>>, %arg5: memref<8x128xf32, #tpu.memory_space<vmem>>) attributes {dimension_semantics = [#tpu.dimension_semantics<parallel>, #tpu.dimension_semantics<arbitrary>], iteration_bounds = array<i64: 1, 1>, scalar_prefetch = 0 : i64, scratch_operands = 1 : i64, tpu.core_type = #tpu.core_type<tc>, window_params = [{transform_indices = @transform_0, window_bounds = array<i64: 16, 128>}, {transform_indices = @transform_1, window_bounds = array<i64: 16, 128>}, {transform_indices = @transform_2, window_bounds = array<i64: 1, 1>}]} {
    %c0 = arith.constant 0 : index
    %c0_0 = arith.constant 0 : index
    %0 = vector.load %arg2[%c0, %c0_0] : memref<16x128xf32, #tpu.memory_space<vmem>>, vector<16x128xf32>
    %c0_1 = arith.constant 0 : index
    %c0_2 = arith.constant 0 : index
    %1 = vector.load %arg3[%c0_1, %c0_2] : memref<16x128xf32, #tpu.memory_space<vmem>>, vector<16x128xf32>
    %2 = arith.subf %0, %1 : vector<16x128xf32>
    %3 = math.absf %2 : vector<16x128xf32>
    %c0_i32 = arith.constant 0 : i32
    %4 = arith.cmpi eq, %arg1, %c0_i32 : i32
    %5 = arith.extui %4 : i1 to i32
    %c0_i32_3 = arith.constant 0 : i32
    %6 = arith.cmpi ne, %5, %c0_i32_3 : i32
    scf.if %6 {
      %cst_10 = arith.constant 0.000000e+00 : f32
      %15 = vector.broadcast %cst_10 : f32 to vector<8x128xf32>
      %c0_11 = arith.constant 0 : index
      %c0_12 = arith.constant 0 : index
      %16 = vector.load %arg5[%c0_11, %c0_12] : memref<8x128xf32, #tpu.memory_space<vmem>>, vector<8x128xf32>
      tpu.vector_store %arg5[%c0_11, %c0_12], %15 {strides = array<i32>} : memref<8x128xf32, #tpu.memory_space<vmem>>, vector<8x128xf32>,
    } else {
    }
    %c0_4 = arith.constant 0 : index
    %c0_5 = arith.constant 0 : index
    %7 = vector.load %arg5[%c0_4, %c0_5] : memref<8x128xf32, #tpu.memory_space<vmem>>, vector<8x128xf32>
    %8 = vector.shape_cast %3 : vector<16x128xf32> to vector<2x8x128xf32>
    %cst = arith.constant dense<0.000000e+00> : vector<8x128xf32>
    %9 = vector.multi_reduction <add>, %8, %cst [0] : vector<2x8x128xf32> to vector<8x128xf32>
    %10 = arith.addf %7, %9 : vector<8x128xf32>
    %c0_6 = arith.constant 0 : index
    %c0_7 = arith.constant 0 : index
    %11 = vector.load %arg5[%c0_6, %c0_7] : memref<8x128xf32, #tpu.memory_space<vmem>>, vector<8x128xf32>
    tpu.vector_store %arg5[%c0_6, %c0_7], %10 {strides = array<i32>} : memref<8x128xf32, #tpu.memory_space<vmem>>, vector<8x128xf32>,
    %c0_i32_8 = arith.constant 0 : i32
    %12 = arith.cmpi eq, %arg1, %c0_i32_8 : i32
    %13 = arith.extui %12 : i1 to i32
    %c0_i32_9 = arith.constant 0 : i32
    %14 = arith.cmpi ne, %13, %c0_i32_9 : i32
    scf.if %14 {
      %c0_10 = arith.constant 0 : index
      %c0_11 = arith.constant 0 : index
      %15 = vector.load %arg5[%c0_10, %c0_11] : memref<8x128xf32, #tpu.memory_space<vmem>>, vector<8x128xf32>
      %16 = vector.shape_cast %15 : vector<8x128xf32> to vector<1x8x128xf32>
      %cst_12 = arith.constant dense<0.000000e+00> : vector<1xf32>
      %17 = vector.multi_reduction <add>, %16, %cst_12 [1, 2] : vector<1x8x128xf32> to vector<1xf32>
      %18 = vector.shape_cast %17 : vector<1xf32> to vector<1x1x1xf32>
      %19 = vector.extract %18[0, 0, 0] : f32 from vector<1x1x1xf32>
      %c0_13 = arith.constant 0 : index
      %c0_14 = arith.constant 0 : index
      %20 = memref.load %arg4[%c0_13, %c0_14] : memref<1x1xf32, #tpu.memory_space<smem>>
      memref.store %19, %arg4[%c0_13, %c0_14] : memref<1x1xf32, #tpu.memory_space<smem>>
    } else {
    }
    return
  }
  func.func @transform_0(%arg0: i32, %arg1: i32) -> (i32, i32) {
    %c1_i32 = arith.constant 1 : i32
    %0 = arith.muli %arg0, %c1_i32 : i32
    %1 = arith.addi %0, %arg1 : i32
    %c0_i32 = arith.constant 0 : i32
    %c0_i32_0 = arith.constant 0 : i32
    return %1, %c0_i32 : i32, i32
  }
  func.func @transform_1(%arg0: i32, %arg1: i32) -> (i32, i32) {
    %c1_i32 = arith.constant 1 : i32
    %0 = arith.muli %arg0, %c1_i32 : i32
    %1 = arith.addi %0, %arg1 : i32
    %c0_i32 = arith.constant 0 : i32
    %c0_i32_0 = arith.constant 0 : i32
    return %1, %c0_i32 : i32, i32
  }
  func.func @transform_2(%arg0: i32, %arg1: i32) -> (i32, i32) {
    %c0_i32 = arith.constant 0 : i32
    %c0_i32_0 = arith.constant 0 : i32
    return %arg0, %c0_i32 : i32, i32
  }
}

</mosaic_0001>

<bundles_post_ra>
// kernel: l1_loss_pallas.1
= control target key start
LH: loop header
LB: loop body
LE: loop exit
PB: predicated region body
PF: predicated region fallthrough
CT: control target
= control target key end

     0   :  { %s157_s0 = inlined_call_operand.vmem [shape: f32[16,128], index: 0, kind: input, shape index: {}]   ;;  %s158_s1 = inlined_call_operand.vmem [shape: f32[16,128], index: 1, kind: input, shape index: {}]   ;;  %s159_s2 = inlined_call_operand.hbm [shape: f32[1,1], index: 2, kind: output, shape index: {}]  }
   0x1   :  { %v56_v0 = vld [vmem:[%s157_s0] sm:$0xff]  ;;  %v57_v1 = vld [vmem:[%s157_s0 + $0x8] sm:$0xff] }
   0x2   :  { %v58_v2 = vld [vmem:[%s158_s1] sm:$0xff]  ;;  %v59_v3 = vld [vmem:[%s158_s1 + $0x8] sm:$0xff] }
   0x3   :  { %v60_v4 = vsub.f32 %v56_v0, %v58_v2 }
   0x4   :  { %7 = vsyncpa [#allocation4], 0  ;;  %v61_v5 = vsub.f32 %v57_v1, %v59_v3  ;;  %s126_s17 = smov [#allocation3]  }
   0x5   :  { %v62_v6 = vand.u32 2147483647, %v60_v4 }
   0x6   :  { %v63_v7 = vand.u32 2147483647, %v61_v5 }
   0x8   :  { %v70_v8 = vadd.f32 %v63_v7, %v62_v6 }
   0xa   :  { %77 = vadd.xlane.f32.xlu0 %v70_v8 }
  0x93   :  { %v78_v9 = vpop.xlane.xlu0 %77 }
  0x94   :  { %v79_v10 = vrot.slane %v78_v9, 4 }
  0x96   :  { %v80_v11 = vadd.f32 %v79_v10, %v78_v9 }
  0x98   :  { %v81_v12 = vrot.slane %v80_v11, 2 }
  0x9a   :  { %v82_v13 = vadd.f32 %v81_v12, %v80_v11 }
  0x9c   :  { %v83_v14 = vrot.slane %v82_v13, 1 }
  0x9e   :  { %v84_v15 = vadd.f32 %v83_v14, %v82_v13 }
  0xa0   :  { %113 = vpush %v84_v15 }
  0xd1   :  { %s114_s0 = spop %113 }
  0xd2   :  { %87 = sst [smem:[#allocation3]] %s114_s0 }
  0xd3   :  { %95 = dma.smem_to_hbm %s126_s17, 16, %s159_s2, [#allocation4]  }
  0xd4   :  { %124 = dma.done.wait [#allocation4], 16  }
  0xd5   :  { %125 = vsyncadd [#allocation4], 4294967280 }
  0xd6   :  { %99 = sfence }
  0xd7   :  { %100 = vsyncpa [#allocation4], 1 }

</bundles_post_ra>
